<compile_context>
chip_gen: v7x
topology: tpu7x:2x2x1
jax: 0.10.0
libtpu: 0.0.40
codegen_flags: <defaults>
</compile_context>

<pallas_src>
import functools

import jax
import jax.numpy as jnp
from jax.experimental import pallas as pl
from jax.experimental.pallas import tpu as pltpu


def _pim_kernel(x_ref, beta_w_ref, beta_b_ref, part_w_ref, xn_ref, out_ref, *, r, temp):
    """One batch tile of PIM_partitioner.forward.

    x_ref:      (TB, F)  activation tile (input dtype)
    beta_w_ref: (F, F)   fc_beta.linear1.weight, pre-transposed to (in, out), bf16
    beta_b_ref: (1, F)   fc_beta.linear1.bias, f32
    part_w_ref: (F, Cp)  partitioner.weight, pre-transposed to (in, out), lane-padded, bf16
    """
    w_dtype = beta_w_ref.dtype
    x_in = x_ref[...]
    x32 = x_in.astype(jnp.float32)

    # bias = x @ W_beta^T + b_beta   (bf16 MXU operands, f32 accumulation)
    bias = jnp.dot(x_in.astype(w_dtype), beta_w_ref[...],
                   preferred_element_type=jnp.float32)
    bias = bias + beta_b_ref[...].astype(jnp.float32)

    # residual + L2 normalize along the feature dim (torch F.normalize, eps=1e-12).
    # Elementwise math stays in f32 on the VPU; rsqrt goes to the idle EUP slot and the
    # row-reduction to the XLU, neither of which contends with the MXU.
    xa = x32 + r * bias
    sumsq = jnp.sum(xa * xa, axis=1, keepdims=True)
    inv = jax.lax.rsqrt(jnp.maximum(sumsq, 1e-24))   # (1e-12)^2 preserves the torch clamp
    xn = xa * inv
    xn_ref[...] = xn.astype(xn_ref.dtype)

    # logits = (xn @ W_part^T) * temp   (bf16 MXU operands, f32 accumulation; temp applied
    # on the f32 accumulator so numerics match scaling-after-matmul, like the torch code)
    out = jnp.dot(xn.astype(w_dtype), part_w_ref[...],
                  preferred_element_type=jnp.float32) * temp
    out_ref[...] = out.astype(out_ref.dtype)


def prepare_params(beta_w, beta_b, part_w, compute_dtype=jnp.bfloat16):
    """One-time parameter prep (hoisted out of the per-call path): transpose the torch
    (out, in) weights to (in, out), cast to the MXU-native compute dtype, reshape the
    bias to (1, F), and lane-pad the class dimension to a multiple of 128."""
    num_features = beta_w.shape[0]
    num_classes = part_w.shape[0]
    c_pad = (-num_classes) % 128

    beta_w_t = jnp.asarray(beta_w).T.astype(compute_dtype)                 # (F, F)
    beta_b_r = jnp.asarray(beta_b).reshape(1, num_features).astype(jnp.float32)
    part_w_t = jnp.asarray(part_w).T.astype(compute_dtype)                 # (F, C)
    if c_pad:
        part_w_t = jnp.pad(part_w_t, ((0, 0), (0, c_pad)))                 # (F, Cp)
    return beta_w_t, beta_b_r, part_w_t, int(num_classes)


@functools.partial(jax.jit,
                   static_argnames=("num_classes", "r", "temp", "block_b"))
def pim_partitioner_forward(x, beta_w_t, beta_b_r, part_w_t, *, num_classes,
                            r=1.0, temp=25.0, block_b=256):
    """x: (B, F). Parameters must come from prepare_params(). Returns (x_normalized, logits)."""
    B, F = x.shape
    Cp = part_w_t.shape[1]

    # Pad the batch so it tiles cleanly (sublane multiple + whole number of tiles).
    Bp = max(8, ((B + 7) // 8) * 8)
    tb = min(block_b, Bp)
    Bp = ((Bp + tb - 1) // tb) * tb
    x_p = jnp.pad(x, ((0, Bp - B), (0, 0))) if Bp != B else x

    kernel = functools.partial(_pim_kernel, r=float(r), temp=float(temp))

    itemsize = x.dtype.itemsize
    flops = 2 * Bp * F * F + 2 * Bp * F * Cp
    bytes_accessed = (Bp * F * itemsize                                 # x in
                      + beta_w_t.size * beta_w_t.dtype.itemsize         # weights
                      + beta_b_r.size * beta_b_r.dtype.itemsize
                      + part_w_t.size * part_w_t.dtype.itemsize
                      + Bp * F * itemsize                               # xn out
                      + Bp * Cp * itemsize)                             # logits out

    xn, out = pl.pallas_call(
        kernel,
        out_shape=(jax.ShapeDtypeStruct((Bp, F), x.dtype),
                   jax.ShapeDtypeStruct((Bp, Cp), x.dtype)),
        grid_spec=pltpu.PrefetchScalarGridSpec(
            num_scalar_prefetch=0,
            grid=(Bp // tb,),
            in_specs=[
                pl.BlockSpec((tb, F), lambda i: (i, 0)),      # activation tile streams
                pl.BlockSpec((F, F), lambda i: (0, 0)),       # weights stay VMEM-resident
                pl.BlockSpec((1, F), lambda i: (0, 0)),
                pl.BlockSpec((F, Cp), lambda i: (0, 0)),
            ],
            out_specs=(
                pl.BlockSpec((tb, F), lambda i: (i, 0)),
                pl.BlockSpec((tb, Cp), lambda i: (i, 0)),     # lane-dense (Cp % 128 == 0)
            ),
        ),
        compiler_params=pltpu.CompilerParams(
            dimension_semantics=("parallel",),                # megacore-shard batch tiles
        ),
        cost_estimate=pl.CostEstimate(
            flops=flops, transcendentals=Bp, bytes_accessed=bytes_accessed),
    )(x_p, beta_w_t, beta_b_r, part_w_t)

    return xn[:B], out[:B, :num_classes]


def _reference_matched(x, beta_w, beta_b, part_w, r, temp, compute_dtype=jnp.bfloat16):
    """Pure-JAX reference that mirrors the kernel numerics (bf16 operands, f32 accum)."""
    x32 = x.astype(jnp.float32)
    bias = jnp.dot(x.astype(compute_dtype), beta_w.T.astype(compute_dtype),
                   preferred_element_type=jnp.float32) + beta_b.astype(jnp.float32)
    xa = x32 + r * bias
    sumsq = jnp.sum(xa * xa, axis=1, keepdims=True)
    xn = xa * jax.lax.rsqrt(jnp.maximum(sumsq, 1e-24))
    out = jnp.dot(xn.astype(compute_dtype), part_w.T.astype(compute_dtype),
                  preferred_element_type=jnp.float32) * temp
    return xn, out


def _reference_f32(x, beta_w, beta_b, part_w, r, temp):
    """Pure f32 reference of the torch forward (loose sanity check)."""
    x32 = x.astype(jnp.float32)
    bias = x32 @ beta_w.T.astype(jnp.float32) + beta_b.astype(jnp.float32)
    xa = x32 + r * bias
    norm = jnp.maximum(jnp.sqrt(jnp.sum(xa * xa, axis=1, keepdims=True)), 1e-12)
    xn = xa / norm
    out = (xn @ part_w.T.astype(jnp.float32)) * temp
    return xn, out


if __name__ == "__main__":
    # Small shapes consistent with the module's (B, num_features) -> (B, num_classes) forward.
    # C=100 (the module default) exercises the lane-padding path; block_b=8 exercises the
    # multi-step batch grid; the second call covers the single-tile default-block path.
    B, F, C = 24, 256, 100
    r, temp = 1.0, 25.0

    key = jax.random.PRNGKey(0)
    kx, kw1, kb1, kw2 = jax.random.split(key, 4)

    x = jax.random.normal(kx, (B, F), dtype=jnp.float32)
    # The module's _initialize() zeroes fc_beta (making that branch a no-op); use small
    # random values so the full path is exercised.
    beta_w = 0.02 * jax.random.normal(kw1, (F, F), dtype=jnp.float32)   # torch (out, in)
    beta_b = 0.02 * jax.random.normal(kb1, (F,), dtype=jnp.float32)
    part_w = 0.05 * jax.random.normal(kw2, (C, F), dtype=jnp.float32)   # torch (out, in)

    beta_w_t, beta_b_r, part_w_t, num_classes = prepare_params(beta_w, beta_b, part_w)

    xn, out = pim_partitioner_forward(x, beta_w_t, beta_b_r, part_w_t,
                                      num_classes=num_classes,
                                      r=r, temp=temp, block_b=8)
    jax.block_until_ready((xn, out))
    assert xn.shape == (B, F) and out.shape == (B, C)

    # Single-tile path (default block_b).
    xn2, out2 = pim_partitioner_forward(x, beta_w_t, beta_b_r, part_w_t,
                                        num_classes=num_classes, r=r, temp=temp)
    jax.block_until_ready((xn2, out2))
    assert jnp.allclose(xn, xn2) and jnp.allclose(out, out2), "tiling-dependent result"

    # Strict check against a reference that uses the same (bf16 in, f32 accum) numerics.
    xn_ref, out_ref = _reference_matched(x, beta_w, beta_b, part_w, r, temp)
    assert jnp.allclose(xn, xn_ref, atol=1e-4, rtol=1e-4), "x_normalized mismatch"
    assert jnp.allclose(out, out_ref, atol=1e-3, rtol=1e-3), "logits mismatch"

    # Loose sanity check against the pure-f32 torch semantics (bf16 matmul rounding).
    xn_f32, out_f32 = _reference_f32(x, beta_w, beta_b, part_w, r, temp)
    assert jnp.allclose(xn, xn_f32, atol=2e-2, rtol=2e-2), "x_normalized sanity mismatch"
    assert jnp.allclose(out, out_f32, atol=0.15, rtol=0.1), "logits sanity mismatch"

    print("KERNEL_OK")
</pallas_src>

<mosaic_0001>
module attributes {stable_mosaic.version = 11 : i64} {
  func.func @_pim_kernel(%arg0: i32, %arg1: memref<8x256xf32, #tpu.memory_space<vmem>>, %arg2: memref<256x256xbf16, #tpu.memory_space<vmem>>, %arg3: memref<1x256xf32, #tpu.memory_space<vmem>>, %arg4: memref<256x128xbf16, #tpu.memory_space<vmem>>, %arg5: memref<8x256xf32, #tpu.memory_space<vmem>>, %arg6: memref<8x128xf32, #tpu.memory_space<vmem>>) attributes {dimension_semantics = [#tpu.dimension_semantics<parallel>], iteration_bounds = array<i64: 3>, scalar_prefetch = 0 : i64, scratch_operands = 0 : i64, tpu.core_type = #tpu.core_type<tc>, window_params = [{transform_indices = @transform_0, window_bounds = array<i64: 8, 256>}, {pipeline_mode = #tpu.pipeline_mode<synchronous>, transform_indices = @transform_1, window_bounds = array<i64: 256, 256>}, {pipeline_mode = #tpu.pipeline_mode<synchronous>, transform_indices = @transform_2, window_bounds = array<i64: 1, 256>}, {pipeline_mode = #tpu.pipeline_mode<synchronous>, transform_indices = @transform_3, window_bounds = array<i64: 256, 128>}, {transform_indices = @transform_4, window_bounds = array<i64: 8, 256>}, {transform_indices = @transform_5, window_bounds = array<i64: 8, 128>}]} {
    %c0 = arith.constant 0 : index
    %c0_0 = arith.constant 0 : index
    %0 = vector.load %arg1[%c0, %c0_0] : memref<8x256xf32, #tpu.memory_space<vmem>>, vector<8x256xf32>
    %1 = arith.truncf %0 : vector<8x256xf32> to vector<8x256xbf16>
    %c0_1 = arith.constant 0 : index
    %c0_2 = arith.constant 0 : index
    %2 = vector.load %arg2[%c0_1, %c0_2] : memref<256x256xbf16, #tpu.memory_space<vmem>>, vector<256x256xbf16>
    %cst = arith.constant dense<0.000000e+00> : vector<8x256xf32>
    %3 = tpu.matmul %1, %2, %cst {dimension_numbers = #tpu.dot_dimension_numbers<[1], [0], [0], [1], [0, 0, 1, 1], [], []>} : vector<8x256xbf16>, vector<256x256xbf16>, vector<8x256xf32> -> vector<8x256xf32>
    %c0_3 = arith.constant 0 : index
    %c0_4 = arith.constant 0 : index
    %4 = vector.load %arg3[%c0_3, %c0_4] : memref<1x256xf32, #tpu.memory_space<vmem>>, vector<1x256xf32>
    %5 = vector.broadcast %4 : vector<1x256xf32> to vector<8x256xf32>
    %6 = arith.addf %3, %5 : vector<8x256xf32>
    %cst_5 = arith.constant 1.000000e+00 : f32
    %7 = vector.broadcast %cst_5 : f32 to vector<8x256xf32>
    %8 = arith.mulf %7, %6 : vector<8x256xf32>
    %9 = arith.addf %0, %8 : vector<8x256xf32>
    %10 = arith.mulf %9, %9 : vector<8x256xf32>
    %cst_6 = arith.constant dense<0.000000e+00> : vector<8xf32>
    %11 = vector.multi_reduction <add>, %10, %cst_6 [1] : vector<8x256xf32> to vector<8xf32>
    %12 = vector.shape_cast %11 : vector<8xf32> to vector<8x1xf32>
    %cst_7 = arith.constant 1.000000e-24 : f32
    %13 = vector.broadcast %cst_7 : f32 to vector<8x1xf32>
    %14 = arith.maximumf %12, %13 : vector<8x1xf32>
    %15 = math.rsqrt %14 : vector<8x1xf32>
    %16 = vector.broadcast %15 : vector<8x1xf32> to vector<8x256xf32>
    %17 = arith.mulf %9, %16 : vector<8x256xf32>
    %c0_8 = arith.constant 0 : index
    %c0_9 = arith.constant 0 : index
    %18 = vector.load %arg5[%c0_8, %c0_9] : memref<8x256xf32, #tpu.memory_space<vmem>>, vector<8x256xf32>
    tpu.vector_store %arg5[%c0_8, %c0_9], %17 {strides = array<i32>} : memref<8x256xf32, #tpu.memory_space<vmem>>, vector<8x256xf32>,
    %19 = arith.truncf %17 : vector<8x256xf32> to vector<8x256xbf16>
    %c0_10 = arith.constant 0 : index
    %c0_11 = arith.constant 0 : index
    %20 = vector.load %arg4[%c0_10, %c0_11] : memref<256x128xbf16, #tpu.memory_space<vmem>>, vector<256x128xbf16>
    %cst_12 = arith.constant dense<0.000000e+00> : vector<8x128xf32>
    %21 = tpu.matmul %19, %20, %cst_12 {dimension_numbers = #tpu.dot_dimension_numbers<[1], [0], [0], [1], [0, 0, 1, 1], [], []>} : vector<8x256xbf16>, vector<256x128xbf16>, vector<8x128xf32> -> vector<8x128xf32>
    %cst_13 = arith.constant 2.500000e+01 : f32
    %22 = vector.broadcast %cst_13 : f32 to vector<8x128xf32>
    %23 = arith.mulf %21, %22 : vector<8x128xf32>
    %c0_14 = arith.constant 0 : index
    %c0_15 = arith.constant 0 : index
    %24 = vector.load %arg6[%c0_14, %c0_15] : memref<8x128xf32, #tpu.memory_space<vmem>>, vector<8x128xf32>
    tpu.vector_store %arg6[%c0_14, %c0_15], %23 {strides = array<i32>} : memref<8x128xf32, #tpu.memory_space<vmem>>, vector<8x128xf32>,
    return
  }
  func.func @transform_0(%arg0: i32) -> (i32, i32) {
    %c0_i32 = arith.constant 0 : i32
    %c0_i32_0 = arith.constant 0 : i32
    return %arg0, %c0_i32 : i32, i32
  }
  func.func @transform_1(%arg0: i32) -> (i32, i32) {
    %c0_i32 = arith.constant 0 : i32
    %c0_i32_0 = arith.constant 0 : i32
    %c0_i32_1 = arith.constant 0 : i32
    return %c0_i32, %c0_i32_0 : i32, i32
  }
  func.func @transform_2(%arg0: i32) -> (i32, i32) {
    %c0_i32 = arith.constant 0 : i32
    %c0_i32_0 = arith.constant 0 : i32
    %c0_i32_1 = arith.constant 0 : i32
    return %c0_i32, %c0_i32_0 : i32, i32
  }
  func.func @transform_3(%arg0: i32) -> (i32, i32) {
    %c0_i32 = arith.constant 0 : i32
    %c0_i32_0 = arith.constant 0 : i32
    %c0_i32_1 = arith.constant 0 : i32
    return %c0_i32, %c0_i32_0 : i32, i32
  }
  func.func @transform_4(%arg0: i32) -> (i32, i32) {
    %c0_i32 = arith.constant 0 : i32
    %c0_i32_0 = arith.constant 0 : i32
    return %arg0, %c0_i32 : i32, i32
  }
  func.func @transform_5(%arg0: i32) -> (i32, i32) {
    %c0_i32 = arith.constant 0 : i32
    %c0_i32_0 = arith.constant 0 : i32
    return %arg0, %c0_i32 : i32, i32
  }
}

</mosaic_0001>

<bundles_post_ra>
// kernel: pim_partitioner_forward.1
= control target key start
LH: loop header
LB: loop body
LE: loop exit
PB: predicated region body
PF: predicated region fallthrough
CT: control target
= control target key end

     0   :  { %11 = vsyncpa [#allocation3], 0  ;;  %s1595_s0 = inlined_call_operand.hbm [shape: f32[24,256], index: 0, kind: input, shape index: {}]   ;;  %s1596_s1 = inlined_call_operand.hbm [shape: bf16[256,256], index: 1, kind: input, shape index: {}]   ;;  %s1597_s2 = inlined_call_operand.vmem [shape: f32[1,256], index: 2, kind: input, shape index: {}]   ;;  %s1598_s3 = inlined_call_operand.hbm [shape: bf16[256,128], index: 3, kind: input, shape index: {}]   ;;  %s1599_s4 = inlined_call_operand.hbm [shape: f32[24,256], index: 4, kind: output, shape index: {0}]   ;;  %s1600_s5 = inlined_call_operand.hbm [shape: f32[24,128], index: 5, kind: output, shape index: {1}]  }
   0x1   :  { %13 = vsyncpa [#allocation3 + $0x1], 0 }
   0x2   :  { %14 = vsyncpa [#allocation6], 0 }
   0x3   :  { %15 = vsyncpa [#allocation4], 0 }
   0x4   :  { %17 = vsyncpa [#allocation4 + $0x1], 0 }
   0x5   :  { %18 = vsyncpa [#allocation10], 0 }
   0x6   :  { %20 = vsyncpa [#allocation10 + $0x1], 0  ;;  %s1334_s18 = smov 0   ;;  %s1336_s19 = smov 0  }
   0x7   :  { %s1338_s20 = smov 0   ;;  %s1340_s21 = smov 0  }
   0x8 LB: > { %s1355_s22 = sadd.s32 4294967295, %s1293_s21   ;;  %s870_s23 = sadd.s32 4294967294, %s1293_s21   ;;  %s1293_s21 = sphi %s1340_s21, %s1619_s21   ;;  %s1289_s20 = sphi %s1338_s20, %s1618_s20   ;;  %s1285_s19 = sphi %s1336_s19, %s1617_s19   ;;  %s1281_s18 = sphi %s1334_s18, %s1616_s18  }
   0x9   : > { %p46_p0 = scmp.ne.s32.totalorder %s1285_s19, %s1281_s18  ;;  %p1601_p1 = scmp.eq.s32.totalorder %s1355_s22, 0 }
   0xa   : > { %p139_p3 = scmp.eq.s32.totalorder %s870_s23, 2  ;;  %p871_p5 = scmp.ge.s32.totalorder %s1293_s21, 1 }
   0xb   : > { %p1364_p4 = por %p1601_p1, %p46_p0  ;;  %p172_p7 = scmp.lt.s32.totalorder %s1293_s21, 4 }
   0xc   : > { %p1369_p6 = por %p139_p3, %p46_p0  ;;  %s1295_s27 = smov [#allocation5]  }
   0xd   : > { %s1604_s24 = scalar_select %p1364_p4, 1, 0 }
   0xe   : > { %s1605_s25 = scalar_select %p1369_p6, 1, 0 }
   0xf   : > { %p1374_p8 = pnand %p871_p5, %p172_p7  ;;  %s184_s28 = sshll.u32 %s1295_s27, 4  ;;  %s185_s28 = int_to_ptr.vmem [resolvable:$true] %s184_s28 }
  0x10   : > { %s1296_s30 = smov [#allocation7]   ;;  %s1105_s9 = scalar_lea.hbm %s1596_s1, 4096 }
  0x11   : > { %s1606_s26 = scalar_select %p1374_p8, 1, 0 }
  0x12   : > { %p977_p9 = pneg %p1374_p8  ;;  %s200_s6 = sshll.u32 %s1296_s30, 4  ;;  %s1386_s6 = int_to_ptr.vmem [resolvable:$true] %s200_s6 }
  0x13   : > { %p1106_p11 = scmp.ne.s32.totalorder %s1596_s1, %s1105_s9  ;;  %p1112_p3 = scmp.lt.u32.totalorder %s1105_s9, %s1596_s1 }
  0x14   : > { %p1382_p10 = pnand %p977_p9, %p1601_p1 }
  0x16   : > { %p1107_p12 = pneg %p1382_p10 }
  0x18   : > { %p1108_p13 = pnand %p1107_p12, %p1106_p11 }
  0x1a   : > { %p1109_p0 = pneg %p1108_p13 }
  0x1c   : > { %p1114_p5 = pnand %p1112_p3, %p1109_p0 }
  0x1e   : > { %1117 = shalt.err (!%p1114_p5)
}
  0x1f   : > { %s1118_s14 = scalar_lea.vmem %s185_s28, 4096  ;;  %p1126_p2 = scmp.lt.s32.totalorder %s185_s28, %s185_s28 }
  0x20   : > { %p1119_p7 = scmp.ne.s32.totalorder %s185_s28, %s1118_s14  ;;  %p1127_p6 = scmp.lt.s32.totalorder %s1118_s14, %s1118_s14 }
  0x22   : > { %p1121_p9 = pnand %p1119_p7, %p1107_p12  ;;  %p1128_p4 = por %p1127_p6, %p1126_p2 }
  0x24   : > { %p1122_p1 = pneg %p1121_p9 }
  0x26   : > { %p1129_p8 = pnand %p1128_p4, %p1122_p1 }
  0x28   : > { %1132 = shalt.err (!%p1129_p8)
}
  0x29   : > { %s1297_s15 = smov 128   ;;  %s1298_s16 = smov 8  }
  0x2a   : > { %980 = dma.hbm_to_vmem [thread:$0]  (!%p1382_p10), %s1596_s1, 4096, %s185_s28, [#allocation6], %s1297_s15, %s1297_s15, %s1298_s16  }
  0x2b   : > { %s1133_s7 = scalar_lea.hbm %s1598_s3, 2048 }
  0x2c   : > { %p1134_p11 = scmp.ne.s32.totalorder %s1598_s3, %s1133_s7  ;;  %p1140_p4 = scmp.lt.u32.totalorder %s1133_s7, %s1598_s3 }
  0x2e   : > { %p1136_p1 = pnand %p1134_p11, %p1107_p12 }
  0x30   : > { %p1137_p2 = pneg %p1136_p1 }
  0x32   : > { %p1142_p6 = pnand %p1140_p4, %p1137_p2 }
  0x34   : > { %1145 = shalt.err (!%p1142_p6)
}
  0x35   : > { %s1146_s28 = scalar_lea.vmem %s1386_s6, 2048  ;;  %p1154_p3 = scmp.lt.s32.totalorder %s1386_s6, %s1386_s6 }
  0x36   : > { %p1147_p8 = scmp.ne.s32.totalorder %s1386_s6, %s1146_s28  ;;  %p1155_p5 = scmp.lt.s32.totalorder %s1146_s28, %s1146_s28 }
  0x38   : > { %p1149_p13 = pnand %p1147_p8, %p1107_p12  ;;  %p1156_p7 = por %p1155_p5, %p1154_p3 }
  0x3a   : > { %p1150_p0 = pneg %p1149_p13 }
  0x3c   : > { %p1157_p9 = pnand %p1156_p7, %p1150_p0 }
  0x3e   : > { %1160 = shalt.err (!%p1157_p9)
}
  0x3f   : > { %s1299_s12 = smov 64   ;;  %s1300_s13 = smov 4  }
  0x40   : > { %983 = dma.hbm_to_vmem [thread:$0]  (!%p1382_p10), %s1598_s3, 2048, %s1386_s6, [#allocation6], %s1299_s12, %s1299_s12, %s1300_s13  }
  0x41   : > { %s1436_s16 = sadd.s32 1, %s1293_s21   ;;  %s33_s23 = sadd.s32 1, %s1289_s20 }
  0x42   : > { %s30_s17 = ssub.s32 %s1293_s21, %s1436_s16  ;;  %p40_p11 = scmp.ne.s32.totalorder %s1289_s20, %s1285_s19 }
  0x43   : > { %p31_p12 = scmp.eq.s32.totalorder %s30_s17, 0  ;;  %p41_p1 = scmp.eq.s32.totalorder %s1293_s21, 0 }
  0x44   : > { %p1608_p4 = scmp.eq.s32.totalorder %s1355_s22, 2  ;;  %p997_p8 = scmp.lt.s32.totalorder %s1293_s21, 3 }
  0x45   : > { %s1445_s27 = scalar_select %p31_p12, %s1289_s20, %s33_s23  }
  0x46   : > { %p42_p2 = por %p41_p1, %p40_p11  ;;  %p1449_p6 = por %p1608_p4, %p40_p11 }
  0x47   : > { %s214_s29 = sand.u32 1, %s1289_s20   ;;  %s939_s6 = sshll.u32 %s1293_s21, 8 }
  0x48   : > { %s875_s7 = sshll.u32 %s214_s29, 4  ;;  %s1459_s10 = scalar_lea.hbm %s1595_s0, %s939_s6 }
  0x49   : > { %s218_s11 = scalar_lea.vmem [#allocation2], %s875_s7  ;;  %p1463_p10 = pnand %p997_p8, %p42_p2 }
  0x4a   : > { %s226_s28 = sshll.u32 %s218_s11, 4  ;;  %s215_s13 = scalar_lea.sflag [#allocation3], %s214_s29  ;;  %s1461_s28 = int_to_ptr.vmem [resolvable:$true] %s226_s28 }
  0x4b   : > { %s1161_s14 = scalar_lea.hbm %s1459_s10, 256  ;;  %p1163_p0 = pneg %p1463_p10 }
  0x4c   : > { %p1162_p13 = scmp.ne.s32.totalorder %s1459_s10, %s1161_s14  ;;  %s1166_s23 = scalar_lea.hbm %s1595_s0, 768 }
  0x4d   : > { %p1167_p7 = scmp.lt.u32.totalorder %s1459_s10, %s1595_s0  ;;  %p1168_p9 = scmp.lt.u32.totalorder %s1166_s23, %s1161_s14 }
  0x4e   : > { %p1164_p3 = pnand %p1163_p0, %p1162_p13  ;;  %p1170_p11 = scmp.lt.u32.totalorder %s1161_s14, %s1459_s10 }
  0x4f   : > { %p1169_p12 = por %p1168_p9, %p1167_p7 }
  0x50   : > { %p1165_p5 = pneg %p1164_p3 }
  0x51   : > { %p1171_p1 = por %p1170_p11, %p1169_p12 }
  0x53   : > { %p1172_p2 = pnand %p1171_p1, %p1165_p5 }
  0x55   : > { %1175 = shalt.err (!%p1172_p2)
}
  0x56   : > { %s1176_s29 = scalar_lea.vmem %s1461_s28, 256  ;;  %s1301_s8 = smov [#allocation2]  }
  0x57   : > { %p1177_p4 = scmp.ne.s32.totalorder %s1461_s28, %s1176_s29  ;;  %s1181_s9 = sshll.u32 %s1301_s8, 4  ;;  %s1182_s9 = int_to_ptr.vmem [resolvable:$false] %s1181_s9 }
  0x58   : > { %s1183_s11 = scalar_lea.vmem %s1182_s9, 512  ;;  %p1184_p3 = scmp.lt.s32.totalorder %s1461_s28, %s1182_s9 }
  0x59   : > { %p1179_p8 = pnand %p1177_p4, %p1163_p0  ;;  %p1185_p7 = scmp.lt.s32.totalorder %s1183_s11, %s1176_s29 }
  0x5b   : > { %p1180_p13 = pneg %p1179_p8  ;;  %p1186_p9 = por %p1185_p7, %p1184_p3 }
  0x5d   : > { %p1187_p12 = pnand %p1186_p9, %p1180_p13 }
  0x5f   : > { %1190 = shalt.err (!%p1187_p12)
}
  0x60   : > { %987 = dma.hbm_to_vmem [thread:$0]  (!%p1463_p10), %s1459_s10, 256, %s1461_s28, %s215_s13  }
  0x61   : > { %p1611_p5 = scmp.ne.s32.totalorder %s1606_s26, 0 }
  0x62   : > { %s1495_s14 = sand.u32 (!%p1611_p5), 1, %s1285_s19   ;;  %p1612_p0 = scmp.ne.s32.totalorder (!%p1611_p5), %s1604_s24, 0 }
  0x63   : > { %235 = sbr.rel (%p1611_p5) target bundleno = 787 (0x313), region = 36  ;;  %s879_s15 = sshll.u32 (!%p1611_p5), %s1495_s14, 4 }
  0x64   : > { %s238_s17 = scalar_lea.sflag (!%p1611_p5), [#allocation3], %s1495_s14  ;;  %s1501_s23 = scalar_lea.vmem (!%p1611_p5), [#allocation2], %s879_s15 }
  0x6a   : > { %1264 = dma.done.wait (%p1612_p0), %s238_s17, 256  }
  0x6b   : > { %1266 = vsyncadd (%p1612_p0), %s238_s17, 4294967040  ;;  %p1613_p10 = scmp.eq.s32.totalorder %s1355_s22, 0 }
  0x6d   : > { %1268 = dma.done.wait (%p1613_p10), [#allocation6], 6144   ;;  %p1614_p11 = pmov %p1613_p10 }
  0x6e   : > { %v1039_v0 = vld [vmem:[#allocation5 + $0x4] ss:$8 sps:$4 sm:$0xff]   ;;  %v1041_v1 = vld [vmem:[#allocation5] ss:$8 sps:$4 sm:$0xff]   ;;  %v1042_v2 = vld [vmem:[#allocation5 + $0x14] ss:$8 sps:$4 sm:$0xff]   ;;  %v320_v43 = vlaneseq }
  0x6f   : > { %1270 = vsyncadd (%p1614_p11), [#allocation6], 4294961152  ;;  %490 = vmatprep.subr.bf16.mxu0 %v1039_v0  ;;  %v1044_v3 = vld [vmem:[#allocation5 + $0x10] ss:$8 sps:$4 sm:$0xff]   ;;  %v1045_v4 = vld [vmem:[#allocation5 + $0x24] ss:$8 sps:$4 sm:$0xff]  }
  0x70   : > { %491 = vmatpush1.bf16.msra.mxu0 %v1041_v1  ;;  %v1047_v5 = vld [vmem:[#allocation5 + $0x20] ss:$8 sps:$4 sm:$0xff]   ;;  %v1048_v6 = vld [vmem:[#allocation5 + $0x34] ss:$8 sps:$4 sm:$0xff]   ;;  %v1050_v7 = vld [vmem:[#allocation5 + $0x30] ss:$8 sps:$4 sm:$0xff]  }
  0x71   : > { %492 = vmatprep.subr.bf16.mxu0 %v1042_v2  ;;  %v1051_v8 = vld [vmem:[#allocation5 + $0x44] ss:$8 sps:$4 sm:$0xff]   ;;  %v1053_v9 = vld [vmem:[#allocation5 + $0x40] ss:$8 sps:$4 sm:$0xff]   ;;  %v1054_v10 = vld [vmem:[#allocation5 + $0x54] ss:$8 sps:$4 sm:$0xff]  }
  0x72   : > { %v1056_v11 = vld [vmem:[#allocation5 + $0x50] ss:$8 sps:$4 sm:$0xff]   ;;  %v1057_v12 = vld [vmem:[#allocation5 + $0x64] ss:$8 sps:$4 sm:$0xff]   ;;  %v1059_v13 = vld [vmem:[#allocation5 + $0x60] ss:$8 sps:$4 sm:$0xff]  }
  0x73   : > { %v1512_v14 = vld [vmem:[%s1501_s23 + $0x8] sm:$0xff]  ;;  %v282_v34 = vld [vmem:[%s1501_s23] sm:$0xff]  ;;  %v321_v44 = vshrl.u32 %v320_v43, 7  ;;  %s273_s10 = scalar_lea.vmem [#allocation8], %s879_s15  ;;  %s940_s28 = sshll.u32 %s1355_s22, 8 }
  0x74   : > { %493 = vmatpush1.bf16.msra.mxu0 %v1044_v3  ;;  %v1060_v15 = vld [vmem:[#allocation5 + $0x74] ss:$8 sps:$4 sm:$0xff]   ;;  %v285_v16 = vpack.c.bf16 %v1512_v14, %v1512_v14  ;;  %v1062_v17 = vld [vmem:[#allocation5 + $0x70] ss:$8 sps:$4 sm:$0xff]   ;;  %v1063_v18 = vld [vmem:[#allocation5 + $0x84] ss:$8 sps:$4 sm:$0xff]   ;;  %v284_v35 = vpack.c.bf16 %v282_v34, %v282_v34  ;;  %s1527_s6 = scalar_lea.hbm %s1599_s4, %s940_s28 }
  0x75   : > { %494 = vmatprep.subr.bf16.mxu0 %v1045_v4  ;;  %v1065_v19 = vld [vmem:[#allocation5 + $0x80] ss:$8 sps:$4 sm:$0xff]   ;;  %v1066_v20 = vld [vmem:[#allocation5 + $0x94] ss:$8 sps:$4 sm:$0xff]   ;;  %v1068_v21 = vld [vmem:[#allocation5 + $0x90] ss:$8 sps:$4 sm:$0xff]  }
  0x76   : > { %522 = vmatprep.mubr.bf16.mxu0 %v285_v16  ;;  %v1069_v22 = vld [vmem:[#allocation5 + $0xa4] ss:$8 sps:$4 sm:$0xff]   ;;  %v1071_v23 = vld [vmem:[#allocation5 + $0xa0] ss:$8 sps:$4 sm:$0xff]   ;;  %v1072_v24 = vld [vmem:[#allocation5 + $0xb4] ss:$8 sps:$4 sm:$0xff]  }
  0x77   : > { %v1074_v25 = vld [vmem:[#allocation5 + $0xb0] ss:$8 sps:$4 sm:$0xff]   ;;  %v1075_v26 = vld [vmem:[#allocation5 + $0xc4] ss:$8 sps:$4 sm:$0xff]   ;;  %v1077_v27 = vld [vmem:[#allocation5 + $0xc0] ss:$8 sps:$4 sm:$0xff]  }
  0x78   : > { %495 = vmatpush1.bf16.msra.mxu0 %v1047_v5  ;;  %v1078_v28 = vld [vmem:[#allocation5 + $0xd4] ss:$8 sps:$4 sm:$0xff]   ;;  %v1080_v29 = vld [vmem:[#allocation5 + $0xd0] ss:$8 sps:$4 sm:$0xff]   ;;  %v1081_v30 = vld [vmem:[#allocation5 + $0xe4] ss:$8 sps:$4 sm:$0xff]  }
  0x79   : > { %496 = vmatprep.subr.bf16.mxu0 %v1048_v6  ;;  %v1083_v31 = vld [vmem:[#allocation5 + $0xe0] ss:$8 sps:$4 sm:$0xff]   ;;  %v1084_v32 = vld [vmem:[#allocation5 + $0xf4] ss:$8 sps:$4 sm:$0xff]   ;;  %v1086_v33 = vld [vmem:[#allocation5 + $0xf0] ss:$8 sps:$4 sm:$0xff]  }
  0x7a   : > { %v1087_v36 = vld [vmem:[#allocation7 + $0x40] sm:$0xff]   ;;  %v1089_v38 = vld [vmem:[#allocation7 + $0x48] sm:$0xff]   ;;  %v1091_v40 = vld [vmem:[#allocation7 + $0x50] sm:$0xff]   ;;  %v322_v45 = vsub.s32 0, %v321_v44  ;;  %v326_v47 = vsub.s32 1, %v321_v44  ;;  %s736_s12 = sshll.u32 %s273_s10, 4  ;;  %s737_s12 = int_to_ptr.vmem [resolvable:$true] %s736_s12 }
  0x7b   : > { %v1088_v37 = vld [vmem:[#allocation7] sm:$0xff]   ;;  %941 = vmatprep.subr.bf16.mxu1 %v1087_v36  ;;  %v1090_v39 = vld [vmem:[#allocation7 + $0x8] sm:$0xff]   ;;  %v1092_v41 = vld [vmem:[#allocation7 + $0x10] sm:$0xff]   ;;  %s717_s29 = scalar_lea.sflag [#allocation4], %s1495_s14  ;;  %s1191_s8 = scalar_lea.vmem %s737_s12, 256 }
  0x7c   : > { %497 = vmatpush1.bf16.msra.mxu0 %v1050_v7  ;;  %942 = vmatpush3.bf16.msra.mxu1 %v1088_v37  ;;  %v1093_v42 = vld [vmem:[#allocation7 + $0x58] sm:$0xff]   ;;  %v318_v46 = vld [vmem:[%s1597_s2] sm:$0x3]  ;;  %v1097_v0 = vld [vmem:[#allocation7 + $0x68] sm:$0xff]   ;;  %p1192_p1 = scmp.ne.s32.totalorder %s737_s12, %s1191_s8  ;;  %s1302_s9 = smov [#allocation8]  }
  0x7d   : > { %498 = vmatprep.subr.bf16.mxu0 %v1051_v8  ;;  %943 = vmatprep.subr.bf16.mxu1 %v1089_v38  ;;  %v323_v48 = vrot.slane %v318_v46, %v322_v45  ;;  %v327_v49 = vrot.slane %v318_v46, %v326_v47  ;;  %v1094_v61 = vld [vmem:[#allocation7 + $0x18] sm:$0xff]   ;;  %v1095_v62 = vld [vmem:[#allocation7 + $0x60] sm:$0xff]   ;;  %v1098_v1 = vld [vmem:[#allocation7 + $0x28] sm:$0xff]   ;;  %s1195_s11 = sshll.u32 %s1302_s9, 4  ;;  %s1196_s11 = int_to_ptr.vmem [resolvable:$false] %s1195_s11 }
  0x7e   : > { %v1096_v63 = vld [vmem:[#allocation7 + $0x20] sm:$0xff]   ;;  %v1099_v2 = vld [vmem:[#allocation7 + $0x70] sm:$0xff]   ;;  %v1101_v4 = vld [vmem:[#allocation7 + $0x78] sm:$0xff]   ;;  %p1193_p2 = pnand %p1192_p1, %p1449_p6  ;;  %s1197_s15 = scalar_lea.vmem %s1196_s11, 512 }
  0x7f   : > { %v1100_v3 = vld [vmem:[#allocation7 + $0x30] sm:$0xff]   ;;  %v1102_v5 = vld [vmem:[#allocation7 + $0x38] sm:$0xff]   ;;  %p1198_p8 = scmp.lt.s32.totalorder %s737_s12, %s1196_s11  ;;  %p1199_p13 = scmp.lt.s32.totalorder %s1197_s15, %s1191_s8 }
  0x80   : > { %499 = vmatpush1.bf16.msra.mxu0 %v1053_v9  ;;  %944 = vmatpush3.bf16.msra.mxu1 %v1090_v39  ;;  %p1194_p4 = pneg %p1193_p2 }
  0x81   : > { %500 = vmatprep.subr.bf16.mxu0 %v1054_v10  ;;  %945 = vmatprep.subr.bf16.mxu1 %v1091_v40  ;;  %p1200_p3 = por %p1199_p13, %p1198_p8 }
  0x83   : > { %p1201_p7 = pnand %p1200_p3, %p1194_p4 }
  0x84   : > { %501 = vmatpush1.bf16.msra.mxu0 %v1056_v11  ;;  %946 = vmatpush3.bf16.msra.mxu1 %v1092_v41 }
  0x85   : > { %502 = vmatprep.subr.bf16.mxu0 %v1057_v12  ;;  %947 = vmatprep.subr.bf16.mxu1 %v1093_v42 }
  0x88   : > { %503 = vmatpush1.bf16.msra.mxu0 %v1059_v13  ;;  %948 = vmatpush3.bf16.msra.mxu1 %v1094_v61 }
  0x89   : > { %504 = vmatprep.subr.bf16.mxu0 %v1060_v15  ;;  %949 = vmatprep.subr.bf16.mxu1 %v1095_v62 }
  0x8c   : > { %505 = vmatpush1.bf16.msra.mxu0 %v1062_v17  ;;  %950 = vmatpush3.bf16.msra.mxu1 %v1096_v63 }
  0x8d   : > { %506 = vmatprep.subr.bf16.mxu0 %v1063_v18  ;;  %951 = vmatprep.subr.bf16.mxu1 %v1097_v0 }
  0x90   : > { %507 = vmatpush1.bf16.msra.mxu0 %v1065_v19  ;;  %952 = vmatpush3.bf16.msra.mxu1 %v1098_v1 }
  0x91   : > { %508 = vmatprep.subr.bf16.mxu0 %v1066_v20  ;;  %953 = vmatprep.subr.bf16.mxu1 %v1099_v2 }
  0x94   : > { %509 = vmatpush1.bf16.msra.mxu0 %v1068_v21  ;;  %954 = vmatpush3.bf16.msra.mxu1 %v1100_v3 }
  0x95   : > { %510 = vmatprep.subr.bf16.mxu0 %v1069_v22  ;;  %955 = vmatprep.subr.bf16.mxu1 %v1101_v4 }
  0x98   : > { %511 = vmatpush1.bf16.msra.mxu0 %v1071_v23  ;;  %956 = vmatpush3.bf16.msra.mxu1 %v1102_v5 }
  0x99   : > { %512 = vmatprep.subr.bf16.mxu0 %v1072_v24 }
  0x9c   : > { %513 = vmatpush1.bf16.msra.mxu0 %v1074_v25 }
  0x9d   : > { %514 = vmatprep.subr.bf16.mxu0 %v1075_v26 }
  0xa0   : > { %515 = vmatpush1.bf16.msra.mxu0 %v1077_v27 }
  0xa1   : > { %516 = vmatprep.subr.bf16.mxu0 %v1078_v28 }
  0xa4   : > { %517 = vmatpush1.bf16.msra.mxu0 %v1080_v29 }
  0xa5   : > { %518 = vmatprep.subr.bf16.mxu0 %v1081_v30 }
  0xa8   : > { %519 = vmatpush1.bf16.msra.mxu0 %v1083_v31 }
  0xa9   : > { %520 = vmatprep.subr.bf16.mxu0 %v1084_v32 }
  0xac   : > { %521 = vmatpush1.bf16.msra.mxu0 %v1086_v33 }
  0xaf   : > { %523 = vmatmul.mubr.bf16.vlgmr.msra.gmra.mrb[0].mxu0 %v284_v35 }
 0x182   : > { %v524_v50 = vpop.f32.mrb[0].mxu0 }
 0x183   : > { %v525_v51 = vadd.f32 %v524_v50, %v323_v48  ;;  %v526_v52 = vpop.f32.mrb[1].mxu0 }
 0x184   : > { %v527_v53 = vadd.f32 %v526_v52, %v327_v49  ;;  %v528_v54 = vpop.f32.mrb[2].mxu0 }
 0x185   : > { %v531_v55 = vadd.f32 %v525_v51, %v282_v34  ;;  %v529_v56 = vpop.f32.mrb[3].mxu0 }
 0x186   : > { %v532_v57 = vadd.f32 %v527_v53, %v1512_v14 }
 0x187   : > { %v533_v58 = vmul.f32 %v531_v55, %v531_v55 }
 0x188   : > { %v534_v59 = vmul.f32 %v532_v57, %v532_v57 }
 0x18a   : > { %v535_v60 = vadd.f32 %v534_v59, %v533_v58 }
 0x18c   : > { %536 = vadd.xlane.f32.xlu0 %v535_v60 }
 0x219   : > { %v537_v6 = vpop.xlane.xlu0 %536 }
 0x21a   : > { %v538_v7 = vmax.f32 %v537_v6, 1e-24 }
 0x21c   : > { %1103 = vrsqrt.f32 %v538_v7 }
 0x226   : > { %v1104_v8 = vpop.eup %1103 }
 0x227   : > { %v541_v9 = vmul.f32 %v1104_v8, %v532_v57  ;;  %v540_v10 = vmul.f32 %v1104_v8, %v531_v55 }
 0x229   : > { %543 = vst [vmem:[%s273_s10 + $0x8] sm:$0xff] %v541_v9  ;;  %v545_v11 = vpack.c.bf16 %v541_v9, %v541_v9  ;;  %v544_v12 = vpack.c.bf16 %v540_v10, %v540_v10  ;;  %542 = vst [vmem:[%s273_s10] sm:$0xff] %v540_v10 }
 0x22b   : > { %706 = vmatprep.mubr.bf16.mxu1 %v545_v11 }
 0x22c   : > { %707 = vmatmul.mubr.bf16.vlgmr.msra.gmra.mrb[0].mxu1 %v544_v12 }
 0x22d   : > { %1204 = shalt.err (!%p1201_p7)
}
 0x22e   : > { %s1205_s17 = scalar_lea.hbm %s1527_s6, 256  ;;  %s1209_s26 = scalar_lea.hbm %s1599_s4, 768 }
 0x22f   : > { %p1206_p9 = scmp.ne.s32.totalorder %s1527_s6, %s1205_s17  ;;  %p1210_p0 = scmp.lt.u32.totalorder %s1527_s6, %s1599_s4 }
 0x230   : > { %p1211_p10 = scmp.lt.u32.totalorder %s1209_s26, %s1205_s17  ;;  %p1213_p1 = scmp.lt.u32.totalorder %s1205_s17, %s1527_s6 }
 0x231   : > { %p1207_p12 = pnand %p1206_p9, %p1449_p6 }
 0x232   : > { %p1212_p11 = por %p1211_p10, %p1210_p0 }
 0x233   : > { %p1208_p5 = pneg %p1207_p12 }
 0x234   : > { %p1214_p2 = por %p1213_p1, %p1212_p11 }
 0x236   : > { %p1215_p4 = pnand %p1214_p2, %p1208_p5 }
 0x238   : > { %1218 = shalt.err (!%p1215_p4)
}
 0x239   : > { %973 = dma.vmem_to_hbm [thread:$0]  (%p1449_p6), %s737_s12, 256, %s1527_s6, %s717_s29  }
 0x23a   : > { %s883_s13 = sshll.u32 %s1495_s14, 3  ;;  %s936_s7 = sshll.u32 %s1355_s22, 7 }
 0x23b   : > { %s280_s8 = scalar_lea.vmem [#allocation9], %s883_s13  ;;  %s1552_s17 = scalar_lea.hbm %s1600_s5, %s936_s7 }
 0x23c   : > { %s749_s9 = sshll.u32 %s280_s8, 4  ;;  %s722_s12 = scalar_lea.sflag [#allocation10], %s1495_s14  ;;  %s1554_s9 = int_to_ptr.vmem [resolvable:$true] %s749_s9 }
 0x23d   : > { %s1219_s6 = scalar_lea.vmem %s1554_s9, 128  ;;  %s1303_s22 = smov [#allocation9]  }
 0x23e   : > { %p1220_p8 = scmp.ne.s32.totalorder %s1554_s9, %s1219_s6  ;;  %s1223_s29 = sshll.u32 %s1303_s22, 4  ;;  %s1224_s29 = int_to_ptr.vmem [resolvable:$false] %s1223_s29 }
 0x23f   : > { %s1225_s23 = scalar_lea.vmem %s1224_s29, 256  ;;  %p1226_p7 = scmp.lt.s32.totalorder %s1554_s9, %s1224_s29 }
 0x240   : > { %p1221_p13 = pnand %p1220_p8, %p1449_p6  ;;  %p1227_p9 = scmp.lt.s32.totalorder %s1225_s23, %s1219_s6 }
 0x242   : > { %p1222_p3 = pneg %p1221_p13  ;;  %p1228_p12 = por %p1227_p9, %p1226_p7 }
 0x244   : > { %p1229_p5 = pnand %p1228_p12, %p1222_p3 }
 0x2ff   : > { %v957_v13 = vpop.f32.mrb[0].mxu1 }
 0x300   : > { %v958_v14 = vpop.f32.mrb[1].mxu1 }
 0x301   : > { %v959_v15 = vadd.f32 %v958_v14, %v957_v13  ;;  %v960_v16 = vpop.f32.mrb[2].mxu1 }
 0x302   : > { %v961_v17 = vpop.f32.mrb[3].mxu1 }
 0x303   : > { %v714_v18 = vmul.f32 25.0, %v959_v15 }
 0x305   : > { %715 = vst [vmem:[%s280_s8] sm:$0xff] %v714_v18 }
 0x306   : > { %1232 = shalt.err (!%p1229_p5)
}
 0x307   : > { %s1233_s14 = scalar_lea.hbm %s1552_s17, 128  ;;  %s1237_s10 = scalar_lea.hbm %s1600_s5, 384 }
 0x308   : > { %p1234_p0 = scmp.ne.s32.totalorder %s1552_s17, %s1233_s14  ;;  %p1238_p1 = scmp.lt.u32.totalorder %s1552_s17, %s1600_s5 }
 0x309   : > { %p1239_p2 = scmp.lt.u32.totalorder %s1237_s10, %s1233_s14  ;;  %p1241_p8 = scmp.lt.u32.totalorder %s1233_s14, %s1552_s17 }
 0x30a   : > { %p1235_p10 = pnand %p1234_p0, %p1449_p6 }
 0x30b   : > { %p1240_p4 = por %p1239_p2, %p1238_p1 }
 0x30c   : > { %p1236_p11 = pneg %p1235_p10 }
 0x30d   : > { %p1242_p13 = por %p1241_p8, %p1240_p4 }
 0x30f   : > { %p1243_p3 = pnand %p1242_p13, %p1236_p11 }
 0x311   : > { %1246 = shalt.err (!%p1243_p3)
}
 0x312   : > { %974 = dma.vmem_to_hbm [thread:$0]  (%p1449_p6), %s1554_s9, 128, %s1552_s17, %s722_s12  }
 0x313 PF: > { %p1000_p7 = scmp.ge.s32.totalorder %s1293_s21, 2  ;;  %s761_s7 = sand.u32 1, %s1281_s18  }
 0x314   : > { %p1615_p9 = scmp.ne.s32.totalorder %s1605_s25, 0  ;;  %s762_s8 = scalar_lea.sflag [#allocation4], %s761_s7 }
 0x316   : > { %p989_p12 = pnand %p1000_p7, %p1615_p9 }
 0x318   : > { %1272 = dma.done.wait (!%p989_p12), %s762_s8, 256  }
 0x319   : > { %1274 = vsyncadd (!%p989_p12), %s762_s8, 4294967040  ;;  %s771_s11 = scalar_lea.sflag [#allocation10], %s761_s7 }
 0x31a   : > { %1276 = dma.done.wait (!%p989_p12), %s771_s11, 128  }
 0x31b   : > { %1278 = vsyncadd (!%p989_p12), %s771_s11, 4294967168  ;;  %p23_p6 = scmp.ge.s32.totalorder %s1436_s16, 5   ;;  %s1616_s18 = smov %s1285_s19 }
 0x31c   : > { %s1617_s19 = smov %s1289_s20  ;;  %s1618_s20 = smov %s1445_s27 }
 0x31d   : > { %s1619_s21 = smov %s1436_s16  ;;  %25 = sbr.rel (!%p23_p6) target bundleno = 8 (0x8), region = 106 }
 0x324   :  { %776 = vsyncpa [#allocation3], 1 }
 0x325   :  { %778 = vsyncpa [#allocation3 + $0x1], 1 }
 0x326   :  { %779 = vsyncpa [#allocation6], 1 }
 0x327   :  { %780 = vsyncpa [#allocation4], 1 }
 0x328   :  { %782 = vsyncpa [#allocation4 + $0x1], 1 }
 0x329   :  { %783 = vsyncpa [#allocation10], 1 }
 0x32a   :  { %785 = vsyncpa [#allocation10 + $0x1], 1 }

</bundles_post_ra>
